<compile_context>
chip_gen: v6e
topology: v6e:2x2x1
jax: 0.10.0
libtpu: 0.0.40
codegen_flags: <defaults>
</compile_context>

<pallas_src>
import functools
import math

import numpy as np

import jax
import jax.numpy as jnp
from jax.experimental import pallas as pl
from jax.experimental.pallas import tpu as pltpu

_LANE = 128
_SUBLANE = 8
_DEFAULT_MIN_PALLAS_BYTES = 512 * 1024          # below this, fused XLA wins
_DEFAULT_TARGET_BLOCK_BYTES = 2 * 1024 * 1024   # ~2 MiB blocks -> 4x buffered ~= 8 MiB VMEM


def _loc_kernel(x_ref, mult_ref, o_ref):
    # x_ref:    (TR, W)  packed latents (lane-dense, W is a multiple of 128)
    # mult_ref: (1, W)   f32 transition-mean row, mult_row[l] == mult[l % D];
    #                    sublane broadcast is free on the VPU
    # o_ref:    (TR, W)  loc = 0.5 * (x + mult), computed in f32 (bf16-safe)
    x = x_ref[...].astype(jnp.float32)
    o_ref[...] = (0.5 * (x + mult_ref[...])).astype(o_ref.dtype)


def lane_width_for_dim(d):
    """W = lcm(D, 128): lane-dense width whose mult pattern repeats every D elements."""
    return (d * _LANE) // math.gcd(d, _LANE)


def make_mult_row(mult, lane_width):
    """Lane-dense (1, W) f32 parameter row; build once per parameter (hoisted out of the hot path)."""
    mult_vec = jnp.atleast_1d(jnp.asarray(mult, dtype=jnp.float32))
    d = mult_vec.shape[0]
    assert lane_width % d == 0
    return jnp.tile(mult_vec.reshape(1, d), (1, lane_width // d))


def _choose_tile_rows(rows, row_bytes, target_block_bytes):
    """Byte-budgeted, sublane-aligned row tile; prefer an even number of grid steps (v7x 2 TCs)."""
    tr = (target_block_bytes // max(row_bytes, 1)) // _SUBLANE * _SUBLANE
    tr = max(tr, _SUBLANE)
    if tr >= rows:
        return rows                               # whole (small) slab in one block
    n_blk = pl.cdiv(rows, tr)
    if n_blk % 2 == 1:                            # even step count balances across v7x's 2 TCs
        n_blk += 1
        tr = max(_SUBLANE, pl.cdiv(pl.cdiv(rows, n_blk), _SUBLANE) * _SUBLANE)
    return min(tr, rows)


@functools.lru_cache(maxsize=None)
def _build_loc_call(rows, lane_width, tile_rows, dtype_name):
    dtype = np.dtype(dtype_name)
    grid = (pl.cdiv(rows, tile_rows),)
    return pl.pallas_call(
        _loc_kernel,
        out_shape=jax.ShapeDtypeStruct((rows, lane_width), dtype),
        grid=grid,
        in_specs=[
            pl.BlockSpec((tile_rows, lane_width), lambda i: (i, 0)),   # streamed row tiles
            pl.BlockSpec((1, lane_width), lambda i: (0, 0)),           # constant index -> resident
        ],
        out_specs=pl.BlockSpec((tile_rows, lane_width), lambda i: (i, 0)),
        compiler_params=pltpu.CompilerParams(
            dimension_semantics=("parallel",),
        ),
        cost_estimate=pl.CostEstimate(
            flops=2 * rows * lane_width,
            transcendentals=0,
            bytes_accessed=2 * rows * lane_width * dtype.itemsize,
        ),
    )


def _loc_xla(x, mult_vec_f32):
    # Fused XLA path (small slabs / ragged tails): already one HBM read + one write.
    return (0.5 * (x.astype(jnp.float32) + mult_vec_f32)).astype(x.dtype)


def transition_loc(prev_latent, mult, *, mult_row=None,
                   min_pallas_bytes=_DEFAULT_MIN_PALLAS_BYTES,
                   target_block_bytes=_DEFAULT_TARGET_BLOCK_BYTES):
    """loc = 0.5 * prev_latent + 0.5 * mult  (mult broadcasts over the last dim)."""
    x = jnp.asarray(prev_latent)
    mult_vec = jnp.atleast_1d(jnp.asarray(mult, dtype=jnp.float32))
    d = mult_vec.shape[0]
    if d > 1 and x.shape[-1] != d:
        raise ValueError(f"last dim of prev_latent ({x.shape[-1]}) must equal dim ({d})")

    n = x.size
    itemsize = x.dtype.itemsize

    # Small-slab gate: custom-call / grid / DMA overhead would dwarf the work.
    if n * itemsize < min_pallas_bytes:
        return _loc_xla(x, mult_vec)

    w = lane_width_for_dim(d)
    row_bytes = w * itemsize
    if row_bytes * _SUBLANE > target_block_bytes:
        # Pathological D: even a minimum 8-row lane-dense block would blow the VMEM budget.
        return _loc_xla(x, mult_vec)

    rows = n // w
    if rows == 0:
        return _loc_xla(x, mult_vec)

    if mult_row is None:
        mult_row = make_mult_row(mult_vec, w)     # per-call build; cache via Transition for hot loops

    x_flat = x.reshape(-1)                        # metadata-only (contiguous, row-major)
    n_main = rows * w
    tr = _choose_tile_rows(rows, row_bytes, target_block_bytes)
    call = _build_loc_call(rows, w, tr, x.dtype.name)

    if n_main == n:
        # Common aligned case: pure metadata reshapes around the kernel, zero extra HBM passes.
        return call(x_flat.reshape(rows, w), mult_row).reshape(x.shape)

    # Ragged tail (< W elements).  Any multiple-of-W split keeps the mult[l % D] phase since
    # W % D == 0.  The tail goes through a tiny fused XLA op instead of jnp.pad + output slice,
    # so the main slab avoids the two extra HBM passes; only the final concat writeback remains.
    loc_main = call(x_flat[:n_main].reshape(rows, w), mult_row).reshape(n_main)
    tail = x_flat[n_main:].reshape(-1, d)
    loc_tail = _loc_xla(tail, mult_vec).reshape(-1)
    return jnp.concatenate([loc_main, loc_tail]).reshape(x.shape)


class Transition:
    """JAX mirror of the PyTorch Transition module (parameters held as arrays)."""

    def __init__(self, init_mult, init_scale):
        self.mult = jnp.squeeze(jnp.asarray(init_mult))
        self.scale = jnp.squeeze(jnp.asarray(init_scale))
        self.dim = self.mult.shape[0] if self.mult.ndim != 0 else 1
        # Hoisted out of the per-SMC-step path: lane-dense mult row built once per parameter.
        self._lane_width = lane_width_for_dim(self.dim)
        self._mult_row = make_mult_row(self.mult, self._lane_width)

    def forward(self, previous_latents=None, time=None, previous_observations=None,
                **loc_kwargs):
        loc = transition_loc(previous_latents[-1], self.mult,
                             mult_row=self._mult_row, **loc_kwargs)
        # TODO(synk): torch.distributions.{Normal,MultivariateNormal} and
        # aesmc.state.set_batch_shape_mode have no Pallas equivalent; (loc, scale)
        # fully parameterize the returned distribution.
        return loc, self.scale


def transition_forward(previous_latents, mult, scale, **loc_kwargs):
    """Functional mirror of Transition.forward; returns the distribution parameters."""
    loc = transition_loc(previous_latents[-1], mult, **loc_kwargs)
    return loc, scale


if __name__ == "__main__":
    key = jax.random.PRNGKey(0)
    k1, k2 = jax.random.split(key)

    # Deterministic "parameters" (what __init__ holds after squeeze()):
    #   mult:  [dim]        transition mean offset
    #   scale: [dim, dim]   covariance (MultivariateNormal since dim > 1)
    batch, num_particles, dim = 2, 8, 4
    init_mult = jnp.linspace(-1.0, 1.0, dim, dtype=jnp.float32)
    init_scale = 0.1 * jnp.eye(dim, dtype=jnp.float32)
    model = Transition(init_mult, init_scale)

    # 1) Module-scale shapes (LGSSM SMC): tiny slab -> fused-XLA gate.
    prev_small = jax.random.normal(k1, (batch, num_particles, dim), dtype=jnp.float32)
    loc_small, scale_out = model.forward(previous_latents=[prev_small])
    loc_small = jax.block_until_ready(loc_small)
    ref_small = 0.5 * prev_small + 0.5 * init_mult[None, None, :]
    assert loc_small.shape == (batch, num_particles, dim)
    assert jnp.allclose(loc_small, ref_small, atol=1e-6), "mismatch (small / XLA path)"

    # 2) Exercise the Pallas path on an aligned slab (R % group == 0).
    prev_big = jax.random.normal(k2, (batch, 512, dim), dtype=jnp.float32)
    loc_big, _ = model.forward(previous_latents=[prev_big], min_pallas_bytes=0)
    loc_big = jax.block_until_ready(loc_big)
    ref_big = 0.5 * prev_big + 0.5 * init_mult[None, None, :]
    assert jnp.allclose(loc_big, ref_big, atol=1e-6), "mismatch (pallas / aligned)"

    # 3) Exercise the Pallas path with a ragged tail (R % group != 0).
    prev_rag = jax.random.normal(k1, (batch, 500, dim), dtype=jnp.float32)
    loc_rag, _ = model.forward(previous_latents=[prev_rag], min_pallas_bytes=0)
    loc_rag = jax.block_until_ready(loc_rag)
    ref_rag = 0.5 * prev_rag + 0.5 * init_mult[None, None, :]
    assert jnp.allclose(loc_rag, ref_rag, atol=1e-6), "mismatch (pallas / ragged tail)"

    print("KERNEL_OK")
</pallas_src>

<mosaic_0001>
module attributes {stable_mosaic.version = 11 : i64} {
  func.func @_loc_kernel(%arg0: i32, %arg1: memref<32x128xf32, #tpu.memory_space<vmem>>, %arg2: memref<1x128xf32, #tpu.memory_space<vmem>>, %arg3: memref<32x128xf32, #tpu.memory_space<vmem>>) attributes {dimension_semantics = [#tpu.dimension_semantics<parallel>], iteration_bounds = array<i64: 1>, scalar_prefetch = 0 : i64, scratch_operands = 0 : i64, tpu.core_type = #tpu.core_type<tc>, window_params = [{transform_indices = @transform_0, window_bounds = array<i64: 32, 128>}, {pipeline_mode = #tpu.pipeline_mode<synchronous>, transform_indices = @transform_1, window_bounds = array<i64: 1, 128>}, {transform_indices = @transform_2, window_bounds = array<i64: 32, 128>}]} {
    %c0 = arith.constant 0 : index
    %c0_0 = arith.constant 0 : index
    %0 = vector.load %arg1[%c0, %c0_0] : memref<32x128xf32, #tpu.memory_space<vmem>>, vector<32x128xf32>
    %c0_1 = arith.constant 0 : index
    %c0_2 = arith.constant 0 : index
    %1 = vector.load %arg2[%c0_1, %c0_2] : memref<1x128xf32, #tpu.memory_space<vmem>>, vector<1x128xf32>
    %2 = vector.broadcast %1 : vector<1x128xf32> to vector<32x128xf32>
    %3 = arith.addf %0, %2 : vector<32x128xf32>
    %cst = arith.constant 5.000000e-01 : f32
    %4 = vector.broadcast %cst : f32 to vector<32x128xf32>
    %5 = arith.mulf %4, %3 : vector<32x128xf32>
    %c0_3 = arith.constant 0 : index
    %c0_4 = arith.constant 0 : index
    %6 = vector.load %arg3[%c0_3, %c0_4] : memref<32x128xf32, #tpu.memory_space<vmem>>, vector<32x128xf32>
    tpu.vector_store %arg3[%c0_3, %c0_4], %5 {strides = array<i32>} : memref<32x128xf32, #tpu.memory_space<vmem>>, vector<32x128xf32>,
    return
  }
  func.func @transform_0(%arg0: i32) -> (i32, i32) {
    %c0_i32 = arith.constant 0 : i32
    %c0_i32_0 = arith.constant 0 : i32
    return %arg0, %c0_i32 : i32, i32
  }
  func.func @transform_1(%arg0: i32) -> (i32, i32) {
    %c0_i32 = arith.constant 0 : i32
    %c0_i32_0 = arith.constant 0 : i32
    %c0_i32_1 = arith.constant 0 : i32
    return %c0_i32, %c0_i32_0 : i32, i32
  }
  func.func @transform_2(%arg0: i32) -> (i32, i32) {
    %c0_i32 = arith.constant 0 : i32
    %c0_i32_0 = arith.constant 0 : i32
    return %arg0, %c0_i32 : i32, i32
  }
}

</mosaic_0001>

<bundles_post_ra>
// kernel: tpu_custom_call.1
= control target key start
LH: loop header
LB: loop body
LE: loop exit
PB: predicated region body
PF: predicated region fallthrough
CT: control target
= control target key end

     0   :  { %7 = vsyncpa [#allocation3], 0  ;;  %s149_s0 = inlined_call_operand.hbm [shape: f32[32,128], index: 0, kind: input, shape index: {}]   ;;  %s150_s1 = inlined_call_operand.vmem [shape: f32[1,128], index: 1, kind: input, shape index: {}]   ;;  %s151_s2 = inlined_call_operand.hbm [shape: f32[32,128], index: 2, kind: output, shape index: {}]  }
   0x1   :  { %8 = vsyncpa [#allocation4], 0  ;;  %s115_s9 = smov [#allocation2]  }
   0x2   :  { %s14_s10 = sshll.u32 %s115_s9, 4  ;;  %s15_s10 = int_to_ptr.vmem [resolvable:$true] %s14_s10 }
   0x3   :  { %s79_s11 = scalar_lea.vmem %s15_s10, 512  ;;  %p84_p1 = scmp.lt.s32.totalorder %s15_s10, %s15_s10 }
   0x4   :  { %p80_p0 = scmp.ne.s32.totalorder %s15_s10, %s79_s11  ;;  %p85_p2 = scmp.lt.s32.totalorder %s79_s11, %s79_s11 }
   0x6   :  { %p86_p3 = por %p85_p2, %p84_p1 }
   0x8   :  { %p87_p4 = pnand %p86_p3, %p80_p0 }
   0xa   :  { %90 = shalt.err (!%p87_p4)
}
   0xb   :  { %s116_s12 = smov 128   ;;  %s117_s13 = smov 8  }
   0xc   :  { %20 = dma.hbm_to_vmem [thread:$0]  %s149_s0, 512, %s15_s10, [#allocation3], %s116_s12, %s116_s12, %s117_s13  }
   0xd   :  { %111 = dma.done.wait [#allocation3], 512  }
   0xe   :  { %112 = vsyncadd [#allocation3], 4294966784  ;;  %v26_v0 = vld [vmem:[#allocation2] sm:$0xff]  ;;  %v27_v2 = vld [vmem:[#allocation2 + $0x8] sm:$0xff]  ;;  %s118_s18 = smov [#allocation5]  }
   0xf   :  { %v66_v1 = vld [vmem:[%s150_s1] ss:$0 sm:$0xff]  ;;  %v28_v5 = vld [vmem:[#allocation2 + $0x10] sm:$0xff]  ;;  %v29_v6 = vld [vmem:[#allocation2 + $0x18] sm:$0xff]  ;;  %s54_s19 = sshll.u32 %s118_s18, 4  ;;  %s55_s19 = int_to_ptr.vmem [resolvable:$true] %s54_s19 }
  0x10   :  { %v37_v3 = vadd.f32 %v66_v1, %v26_v0  ;;  %v38_v4 = vadd.f32 %v66_v1, %v27_v2  ;;  %v39_v7 = vadd.f32 %v66_v1, %v28_v5  ;;  %v40_v8 = vadd.f32 %v66_v1, %v29_v6  ;;  %s91_s0 = scalar_lea.vmem %s55_s19, 512  ;;  %p96_p6 = scmp.lt.s32.totalorder %s55_s19, %s55_s19 }
  0x11   :  { %p92_p5 = scmp.ne.s32.totalorder %s55_s19, %s91_s0  ;;  %p97_p7 = scmp.lt.s32.totalorder %s91_s0, %s91_s0 }
  0x12   :  { %v41_v9 = vmul.f32 0.5, %v37_v3  ;;  %v42_v10 = vmul.f32 0.5, %v38_v4  ;;  %v43_v11 = vmul.f32 0.5, %v39_v7  ;;  %v44_v12 = vmul.f32 0.5, %v40_v8 }
  0x13   :  { %p98_p8 = por %p97_p7, %p96_p6 }
  0x14   :  { %45 = vst [vmem:[#allocation5] sm:$0xff] %v41_v9  ;;  %46 = vst [vmem:[#allocation5 + $0x8] sm:$0xff] %v42_v10 }
  0x15   :  { %47 = vst [vmem:[#allocation5 + $0x10] sm:$0xff] %v43_v11  ;;  %48 = vst [vmem:[#allocation5 + $0x18] sm:$0xff] %v44_v12  ;;  %p99_p9 = pnand %p98_p8, %p92_p5 }
  0x17   :  { %102 = shalt.err (!%p99_p9)
}
  0x18   :  { %60 = dma.vmem_to_hbm [thread:$0]  %s55_s19, 512, %s151_s2, [#allocation4], %s116_s12, %s116_s12, %s117_s13  }
  0x19   :  { %113 = dma.done.wait [#allocation4], 512  }
  0x1a   :  { %114 = vsyncadd [#allocation4], 4294966784 }
  0x1b   :  { %64 = vsyncpa [#allocation3], 1 }
  0x1c   :  { %65 = vsyncpa [#allocation4], 1 }

</bundles_post_ra>
